<compile_context>
chip_gen: v7x
topology: tpu7x:2x2x1
jax: 0.10.0
libtpu: 0.0.40
codegen_flags: <defaults>
</compile_context>

<pallas_src>
from functools import partial

import jax
import jax.numpy as jnp
from jax.experimental import pallas as pl
from jax.experimental.pallas import tpu as pltpu

BATCH = 2
SEQ = 8
HIDDEN = 32
HIDDEN_PAD = 128  # lane-dense padded output width (multiple of 128)


# ---------------------------------------------------------------------------
# Pallas kernel: y = relu(x @ w_pad + b_pad)
# x: (M, HIDDEN)  w_pad: (HIDDEN, HIDDEN_PAD)  b_pad: (1, HIDDEN_PAD)
# out: (M, HIDDEN_PAD)  -- lane-dense (128 lanes) so stores are unmasked.
# The whole problem is a single VMEM tile: no grid, no index_maps, no
# pipelining; every operand is mapped whole-array into VMEM.
# ---------------------------------------------------------------------------
def _linear_relu_kernel(x_ref, w_ref, b_ref, o_ref):
    y = jnp.dot(x_ref[...], w_ref[...], preferred_element_type=jnp.float32)
    y = y + b_ref[...]  # (M, 128) + (1, 128) broadcast over rows (one VPU add)
    o_ref[...] = jnp.maximum(y, 0.0).astype(o_ref.dtype)


def _linear_relu_pallas(x2d, w_pad, b_pad):
    m, _ = x2d.shape
    return pl.pallas_call(
        _linear_relu_kernel,
        out_shape=jax.ShapeDtypeStruct((m, HIDDEN_PAD), jnp.float32),
        in_specs=[
            pl.BlockSpec(memory_space=pltpu.MemorySpace.VMEM),
            pl.BlockSpec(memory_space=pltpu.MemorySpace.VMEM),
            pl.BlockSpec(memory_space=pltpu.MemorySpace.VMEM),
        ],
        out_specs=pl.BlockSpec(memory_space=pltpu.MemorySpace.VMEM),
    )(x2d, w_pad, b_pad)


# Whole forward, jitted: reshape -> kernel -> slice padded lanes -> reshape.
@jax.jit
def _forward(x, w_pad, b_pad):
    b, s, h = x.shape
    y_pad = _linear_relu_pallas(x.reshape(b * s, h), w_pad, b_pad)
    return y_pad[:, :h].reshape(b, s, h)


# ---------------------------------------------------------------------------
# Synthetic wrapped model (the `self.model` inside TraceModelWrapper).
# Returns a dict, exercising the wrapper's dict-handling branch.
# ---------------------------------------------------------------------------
class SyntheticInnerModel:
    def __init__(self, key, hidden=HIDDEN):
        kw, kb = jax.random.split(key)
        # deterministic init (PRNGKey-based, no checkpoint load)
        self.w = jax.random.normal(kw, (hidden, hidden), jnp.float32) * 0.1
        self.b = jax.random.normal(kb, (1, hidden), jnp.float32) * 0.1
        # zero-pad the output-hidden (N) axis to 128 lanes for lane-dense
        # stores; padded columns produce relu(0) = 0 and are sliced off.
        self.w_pad = jnp.pad(self.w, ((0, 0), (0, HIDDEN_PAD - hidden)))
        self.b_pad = jnp.pad(self.b, ((0, 0), (0, HIDDEN_PAD - hidden)))

    def __call__(self, x):
        # x: [B, S, H]  ->  {"last_hidden_state": relu(x @ w + b)}
        return {"last_hidden_state": _forward(x, self.w_pad, self.b_pad)}


# ---------------------------------------------------------------------------
# TraceModelWrapper equivalent: exact forward semantics of the PyTorch module.
# ---------------------------------------------------------------------------
class TraceModelWrapper:
    def __init__(self, model):
        self.model = model

    def forward(self, *input_data, **input_dict):
        out = self.model(*input_data, **input_dict)
        if isinstance(out, dict):
            return list(out.values())
        return out

    __call__ = forward


if __name__ == "__main__":
    key = jax.random.PRNGKey(0)
    k_model, k_x = jax.random.split(key)

    inner = SyntheticInnerModel(k_model)
    wrapper = TraceModelWrapper(inner)

    x = jax.random.normal(k_x, (BATCH, SEQ, HIDDEN), jnp.float32)

    outputs = wrapper(x)  # dict -> list of values, per TraceModelWrapper
    assert isinstance(outputs, list) and len(outputs) == 1
    y = jax.block_until_ready(outputs[0])

    # sanity check against plain-JAX reference
    ref = jnp.maximum(x @ inner.w + inner.b[0], 0.0)
    assert y.shape == (BATCH, SEQ, HIDDEN)
    assert jnp.allclose(y, ref, atol=1e-5, rtol=1e-5)

    print("KERNEL_OK")
</pallas_src>

<mosaic_0001>
module attributes {stable_mosaic.version = 11 : i64} {
  func.func @_linear_relu_kernel(%arg0: memref<16x32xf32, #tpu.memory_space<vmem>>, %arg1: memref<32x128xf32, #tpu.memory_space<vmem>>, %arg2: memref<1x128xf32, #tpu.memory_space<vmem>>, %arg3: memref<16x128xf32, #tpu.memory_space<vmem>>) attributes {dimension_semantics = [], scalar_prefetch = 0 : i64, scratch_operands = 0 : i64, tpu.core_type = #tpu.core_type<tc>} {
    %c0 = arith.constant 0 : index
    %c0_0 = arith.constant 0 : index
    %0 = vector.load %arg0[%c0, %c0_0] : memref<16x32xf32, #tpu.memory_space<vmem>>, vector<16x32xf32>
    %c0_1 = arith.constant 0 : index
    %c0_2 = arith.constant 0 : index
    %1 = vector.load %arg1[%c0_1, %c0_2] : memref<32x128xf32, #tpu.memory_space<vmem>>, vector<32x128xf32>
    %cst = arith.constant dense<0.000000e+00> : vector<16x128xf32>
    %2 = tpu.matmul %0, %1, %cst {dimension_numbers = #tpu.dot_dimension_numbers<[1], [0], [0], [1], [0, 0, 1, 1], [], []>} : vector<16x32xf32>, vector<32x128xf32>, vector<16x128xf32> -> vector<16x128xf32>
    %c0_3 = arith.constant 0 : index
    %c0_4 = arith.constant 0 : index
    %3 = vector.load %arg2[%c0_3, %c0_4] : memref<1x128xf32, #tpu.memory_space<vmem>>, vector<1x128xf32>
    %4 = vector.broadcast %3 : vector<1x128xf32> to vector<16x128xf32>
    %5 = arith.addf %2, %4 : vector<16x128xf32>
    %cst_5 = arith.constant 0.000000e+00 : f32
    %6 = vector.broadcast %cst_5 : f32 to vector<16x128xf32>
    %7 = arith.maximumf %5, %6 : vector<16x128xf32>
    %c0_6 = arith.constant 0 : index
    %c0_7 = arith.constant 0 : index
    %8 = vector.load %arg3[%c0_6, %c0_7] : memref<16x128xf32, #tpu.memory_space<vmem>>, vector<16x128xf32>
    tpu.vector_store %arg3[%c0_6, %c0_7], %7 {strides = array<i32>} : memref<16x128xf32, #tpu.memory_space<vmem>>, vector<16x128xf32>,
    return
  }
}

</mosaic_0001>

<bundles_post_ra>
// kernel: _forward.1
= control target key start
LH: loop header
LB: loop body
LE: loop exit
PB: predicated region body
PF: predicated region fallthrough
CT: control target
= control target key end

     0   :  { %8 = vsyncpa [#allocation3], 0  ;;  %s284_s0 = inlined_call_operand.hbm [shape: f32[16,32], index: 0, kind: input, shape index: {}]   ;;  %s285_s1 = inlined_call_operand.hbm [shape: f32[32,128], index: 1, kind: input, shape index: {}]   ;;  %s286_s2 = inlined_call_operand.vmem [shape: f32[1,128], index: 2, kind: input, shape index: {}]   ;;  %s287_s3 = inlined_call_operand.vmem [shape: f32[16,128], index: 3, kind: output, shape index: {}]  }
   0x1   :  { %9 = vsyncpa [#allocation5], 0  ;;  %s227_s12 = smov [#allocation2]   ;;  %s179_s16 = scalar_lea.hbm %s284_s0, 256 }
   0x2   :  { %s15_s13 = sshll.u32 %s227_s12, 4  ;;  %p180_p0 = scmp.ne.s32.totalorder %s284_s0, %s179_s16  ;;  %s16_s13 = int_to_ptr.vmem [resolvable:$true] %s15_s13 }
   0x3   :  { %p183_p1 = scmp.lt.u32.totalorder %s179_s16, %s284_s0 }
   0x5   :  { %p185_p2 = pnand %p183_p1, %p180_p0 }
   0x7   :  { %188 = shalt.err (!%p185_p2)
}
   0x8   :  { %s189_s21 = scalar_lea.vmem %s16_s13, 256  ;;  %p194_p4 = scmp.lt.s32.totalorder %s16_s13, %s16_s13 }
   0x9   :  { %p190_p3 = scmp.ne.s32.totalorder %s16_s13, %s189_s21  ;;  %p195_p5 = scmp.lt.s32.totalorder %s189_s21, %s189_s21 }
   0xb   :  { %p196_p6 = por %p195_p5, %p194_p4 }
   0xd   :  { %p197_p7 = pnand %p196_p6, %p190_p3 }
   0xf   :  { %200 = shalt.err (!%p197_p7)
}
  0x10   :  { %s228_s22 = smov 128   ;;  %s229_s23 = smov 8  }
  0x11   :  { %21 = dma.hbm_to_vmem [thread:$0]  %s284_s0, 256, %s16_s13, [#allocation3], %s228_s22, %s228_s22, %s229_s23  }
  0x12   :  { %s230_s26 = smov [#allocation4]   ;;  %s201_s30 = scalar_lea.hbm %s285_s1, 512 }
  0x13   :  { %s27_s27 = sshll.u32 %s230_s26, 4  ;;  %p202_p8 = scmp.ne.s32.totalorder %s285_s1, %s201_s30  ;;  %s28_s27 = int_to_ptr.vmem [resolvable:$true] %s27_s27 }
  0x14   :  { %p205_p9 = scmp.lt.u32.totalorder %s201_s30, %s285_s1 }
  0x16   :  { %p207_p10 = pnand %p205_p9, %p202_p8 }
  0x18   :  { %210 = shalt.err (!%p207_p10)
}
  0x19   :  { %s211_s8 = scalar_lea.vmem %s28_s27, 512  ;;  %p216_p12 = scmp.lt.s32.totalorder %s28_s27, %s28_s27 }
  0x1a   :  { %p212_p11 = scmp.ne.s32.totalorder %s28_s27, %s211_s8  ;;  %p217_p13 = scmp.lt.s32.totalorder %s211_s8, %s211_s8 }
  0x1c   :  { %p218_p0 = por %p217_p13, %p216_p12 }
  0x1e   :  { %p219_p1 = pnand %p218_p0, %p212_p11 }
  0x20   :  { %222 = shalt.err (!%p219_p1)
}
  0x21   :  { %33 = dma.hbm_to_vmem [thread:$0]  %s285_s1, 512, %s28_s27, [#allocation5], %s228_s22, %s228_s22, %s229_s23  }
  0x22   :  { %223 = dma.done.wait [#allocation3], 256  }
  0x23   :  { %224 = vsyncadd [#allocation3], 4294967040 }
  0x24   :  { %225 = dma.done.wait [#allocation5], 512  }
  0x25   :  { %226 = vsyncadd [#allocation5], 4294966784  ;;  %vm55_vm0 = vcmask 261120   ;;  %v44_v0 = vld [vmem:[#allocation4] sm:$0xff]  ;;  %v45_v1 = vld [vmem:[#allocation4 + $0x8] sm:$0xff] }
  0x26   :  { %v46_v2 = vld [vmem:[#allocation4 + $0x10] sm:$0xff]  ;;  %v167_v3 = vpack.c.bf16 %v45_v1, %v44_v0  ;;  %v47_v4 = vld [vmem:[#allocation4 + $0x18] sm:$0xff] }
  0x27   :  { %v42_v5 = vld [vmem:[#allocation2] sm:$0xff]  ;;  %v171_v6 = vpack.c.bf16 %v47_v4, %v46_v2  ;;  %v43_v7 = vld [vmem:[#allocation2 + $0x8] sm:$0xff] }
  0x28   :  { %164 = vmatprep.mubr.msk.f32.mxu0 %vm55_vm0, %v42_v5  ;;  %168 = vmatprep.subr.bf16.mxu0 %v167_v3  ;;  %v147_v8 = vld [vmem:[%s286_s2] ss:$0 sm:$0xff] }
  0x29   :  { %170 = vmatpush3.bf16.msra.mxu0 %v167_v3 }
  0x2a   :  { %172 = vmatprep.subr.bf16.mxu0 %v171_v6 }
  0x2d   :  { %174 = vmatpush3.bf16.msra.mxu0 %v171_v6 }
  0x30   :  { %165 = vmatmul.mubr.msk.f32.vlgmr.msra.gmra.mrb[0].mxu0 %vm55_vm0, %v43_v7 }
 0x103   :  { %v166_v9 = vpop.f32.mrb[0].mxu0 }
 0x104   :  { %v134_v10 = vadd.f32 %v166_v9, %v147_v8  ;;  %v128_v11 = vpop.f32.mrb[1].mxu0 }
 0x105   :  { %v129_v12 = vadd.f32 %v147_v8, %v128_v11 }
 0x106   :  { %v138_v13 = vmax.f32 %v134_v10, 0.0 }
 0x107   :  { %v137_v14 = vmax.f32 %v129_v12, 0.0 }
 0x108   :  { %140 = vst [vmem:[%s287_s3 + $0x8] sm:$0xff] %v138_v13 }
 0x109   :  { %139 = vst [vmem:[%s287_s3] sm:$0xff] %v137_v14 }
 0x10a   :  { %145 = vsyncpa [#allocation3], 1 }
 0x10b   :  { %146 = vsyncpa [#allocation5], 1 }

</bundles_post_ra>
